<compile_context>
chip_gen: v7x
topology: tpu7x:2x2x1
jax: 0.10.0
libtpu: 0.0.40
codegen_flags: <defaults>
</compile_context>

<pallas_src>
import math

import jax
import jax.numpy as jnp
from jax.experimental import pallas as pl
from jax.experimental.pallas import tpu as pltpu

LANE = 128
SUBLANE = 8


def _round_up(x, m):
    return ((x + m - 1) // m) * m


def _decoder_kernel(z_ref, w1_ref, b1_ref, w2_ref, b2_ref, w3_ref, b3_ref, o_ref):
    # z_ref: (tm, latent_dim) row tile of the flattened input.  Cast to the weight dtype
    # in-kernel (free-ish VPU work) so z is read from HBM once, in its original dtype.
    z = z_ref[...].astype(w1_ref.dtype)

    # Layer 1: Linear(latent -> hidden) + ReLU   (+ Dropout == identity in eval mode)
    h1 = jnp.dot(z, w1_ref[...], preferred_element_type=jnp.float32) + b1_ref[...]
    h1 = jnp.maximum(h1, 0.0)

    # Layer 2: Linear(hidden -> hidden) + ReLU   (+ Dropout == identity in eval mode)
    h2 = jnp.dot(h1.astype(w2_ref.dtype), w2_ref[...],
                 preferred_element_type=jnp.float32) + b2_ref[...]
    h2 = jnp.maximum(h2, 0.0)

    # Layer 3: Linear(hidden -> output)
    out = jnp.dot(h2.astype(w3_ref.dtype), w3_ref[...],
                  preferred_element_type=jnp.float32) + b3_ref[...]
    o_ref[...] = out.astype(o_ref.dtype)


def prepare_decoder_params(params, weight_dtype=jnp.bfloat16):
    """One-time prep: pad the hidden dim to a multiple of 128 lanes and cast weights.

    Returns (w1, b1, w2, b2, w3, b3) with shapes
      w1: (latent_dim, Hp)  b1: (1, Hp)
      w2: (Hp, Hp)          b2: (1, Hp)
      w3: (Hp, output_dim)  b3: (1, output_dim)
    Padding is zeros, so the computation is identical to the unpadded one.  Biases stay
    f32 (they are added to the f32 MXU accumulator).
    """
    w1, b1, w2, b2, w3, b3 = params
    _, hidden_dim = w1.shape
    hp = _round_up(hidden_dim, LANE)
    wd = jnp.dtype(weight_dtype)

    w1p = jnp.pad(w1, ((0, 0), (0, hp - hidden_dim))).astype(wd)
    w2p = jnp.pad(w2, ((0, hp - hidden_dim), (0, hp - hidden_dim))).astype(wd)
    w3p = jnp.pad(w3, ((0, hp - hidden_dim), (0, 0))).astype(wd)
    b1p = jnp.pad(b1.reshape(1, -1), ((0, 0), (0, hp - hidden_dim))).astype(jnp.float32)
    b2p = jnp.pad(b2.reshape(1, -1), ((0, 0), (0, hp - hidden_dim))).astype(jnp.float32)
    b3p = b3.reshape(1, -1).astype(jnp.float32)
    return (w1p, b1p, w2p, b2p, w3p, b3p)


def _build_call(out_shape, grid, tm, latent_dim, hp, output_dim, vmem_limit, cost,
                resident_weights):
    if resident_weights:
        # Untiled full-array VMEM operands: single-buffered, loaded once, outside the
        # streamed pipeline.
        def w_spec(shape):
            return pl.BlockSpec(memory_space=pltpu.MemorySpace.VMEM)
    else:
        # Fallback: constant-index-map blocks (never re-DMA'd across grid steps, but
        # double-buffered by the default pipeline).
        def w_spec(shape):
            return pl.BlockSpec(shape, lambda i: (0, 0))

    in_specs = [
        pl.BlockSpec((tm, latent_dim), lambda i: (i, 0)),   # streamed z row tile
        w_spec((latent_dim, hp)),                            # w1
        w_spec((1, hp)),                                     # b1
        w_spec((hp, hp)),                                    # w2
        w_spec((1, hp)),                                     # b2
        w_spec((hp, output_dim)),                            # w3
        w_spec((1, output_dim)),                             # b3
    ]
    return pl.pallas_call(
        _decoder_kernel,
        out_shape=out_shape,
        grid_spec=pltpu.PrefetchScalarGridSpec(
            num_scalar_prefetch=0,
            grid=grid,
            in_specs=in_specs,
            out_specs=pl.BlockSpec((tm, output_dim), lambda i: (i, 0)),
        ),
        compiler_params=pltpu.CompilerParams(
            dimension_semantics=("parallel",),   # row axis shards across v7x TensorCores
            vmem_limit_bytes=vmem_limit,
        ),
        cost_estimate=cost,
    )


def variational_decoder_forward(z, prepared_params, *, tm=512):
    """z: (batch, seq, latent_dim) -> (batch, seq, output_dim).

    prepared_params must come from prepare_decoder_params (padded/cast once at init).
    For repeated use, wrap this function in jax.jit.
    """
    w1, b1, w2, b2, w3, b3 = prepared_params
    batch, seq, latent_dim = z.shape
    assert w1.shape[0] == latent_dim, "latent_dim mismatch between z and prepared params"
    hp = w1.shape[1]
    output_dim = w3.shape[1]

    m = batch * seq
    z_flat = z.reshape(m, latent_dim)

    # ---- grid-aware row tiling --------------------------------------------------------
    tm_req = _round_up(max(int(tm), SUBLANE), SUBLANE)
    if m <= SUBLANE:
        tm_eff = m                                    # single block; dim == full array dim
    elif m <= tm_req:
        # Small problem: keep >= 2 grid steps so the "parallel" axis feeds both v7x
        # TensorCores instead of collapsing to grid=(1,).
        tm_eff = _round_up(pl.cdiv(m, 2), SUBLANE)
    else:
        tm_eff = tm_req
    mp = _round_up(m, tm_eff)
    grid = (mp // tm_eff,)

    # Row padding only when the tile does not divide m (a narrow, latent_dim-wide pass;
    # the old 8x lane padding of z and the output is gone entirely).
    if mp != m:
        z_flat = jnp.pad(z_flat, ((0, mp - m), (0, 0)))

    # ---- VMEM budget / compiler hints ---------------------------------------------------
    itm_w = w1.dtype.itemsize
    itm_z = jnp.dtype(z.dtype).itemsize
    weight_bytes = (latent_dim * hp + hp * hp + hp * output_dim) * itm_w
    bias_bytes = (2 * hp + output_dim) * 4
    io_bytes = 2 * tm_eff * (latent_dim + output_dim) * itm_z     # double-buffered streams
    inter_bytes = 2 * tm_eff * hp * 4                              # h1/h2 f32 temporaries
    need_resident = weight_bytes + bias_bytes + io_bytes + inter_bytes
    need_fallback = need_resident + weight_bytes + bias_bytes      # 2x-buffered weights

    try:
        vmem_cap = pltpu.get_tpu_info().vmem_capacity_bytes
    except Exception:
        vmem_cap = 64 * 1024 * 1024    # conservative (v7x-sized) fallback
    vmem_budget = int(0.8 * vmem_cap)  # leave headroom for compiler-internal scratch

    # Guard the resident-weight design (generation-specific: 64 MiB on v7x, 128 on v5e/v6e).
    # TODO(synk): for hidden dims whose weights exceed the budget, stream w2/w3 column
    #             blocks with pltpu.emit_pipeline inside the body instead of failing.
    if need_resident > vmem_budget:
        raise ValueError(
            f"Resident-weight decoder kernel needs ~{need_resident / 2**20:.1f} MiB VMEM "
            f"but only ~{vmem_budget / 2**20:.1f} MiB is available on this chip; use bf16 "
            f"weights, reduce hidden_dim, or add a weight-streaming path.")

    cost = pl.CostEstimate(
        flops=2 * mp * (latent_dim * hp + hp * hp + hp * output_dim),
        transcendentals=0,
        bytes_accessed=int(m * latent_dim * itm_z + weight_bytes + bias_bytes
                           + m * output_dim * itm_z),
    )

    out_shape = jax.ShapeDtypeStruct((mp, output_dim), z.dtype)
    args = (z_flat, w1, b1, w2, b2, w3, b3)

    vmem_limit = int(min(max(2 * need_resident, 32 * 1024 * 1024), vmem_budget))
    try:
        out_flat = _build_call(out_shape, grid, tm_eff, latent_dim, hp, output_dim,
                               vmem_limit, cost, resident_weights=True)(*args)
    except (pltpu.LoweringException, NotImplementedError, ValueError, TypeError):
        # Narrow fallback for builds that reject untiled VMEM operands on pallas_call;
        # unexpected runtime/compile errors (e.g. genuine VMEM OOM) still propagate.
        vmem_limit = int(min(max(2 * need_fallback, 32 * 1024 * 1024), vmem_budget))
        out_flat = _build_call(out_shape, grid, tm_eff, latent_dim, hp, output_dim,
                               vmem_limit, cost, resident_weights=False)(*args)

    if mp != m:
        out_flat = out_flat[:m]
    return out_flat.reshape(batch, seq, output_dim)


def init_params(key, latent_dim, hidden_dim, output_dim, dtype=jnp.float32):
    """Deterministic init mimicking nn.Linear default: U(-1/sqrt(fan_in), 1/sqrt(fan_in))."""
    ks = jax.random.split(key, 6)

    def linear(kw, kb, fan_in, fan_out):
        bound = 1.0 / math.sqrt(fan_in)
        w = jax.random.uniform(kw, (fan_in, fan_out), dtype, -bound, bound)
        b = jax.random.uniform(kb, (fan_out,), dtype, -bound, bound)
        return w, b

    w1, b1 = linear(ks[0], ks[1], latent_dim, hidden_dim)
    w2, b2 = linear(ks[2], ks[3], hidden_dim, hidden_dim)
    w3, b3 = linear(ks[4], ks[5], hidden_dim, output_dim)
    return (w1, b1, w2, b2, w3, b3)


def _reference_forward(z, params):
    w1, b1, w2, b2, w3, b3 = params
    b, s, l = z.shape
    x = z.reshape(-1, l)
    x = jnp.maximum(x @ w1 + b1, 0.0)
    x = jnp.maximum(x @ w2 + b2, 0.0)
    x = x @ w3 + b3
    return x.reshape(b, s, -1)


if __name__ == "__main__":
    latent_dim, hidden_dim, output_dim = 16, 32, 16
    batch, seq = 2, 8

    key = jax.random.PRNGKey(0)
    k_z, k_p = jax.random.split(key)
    z = jax.random.normal(k_z, (batch, seq, latent_dim), dtype=jnp.float32)
    params = init_params(k_p, latent_dim, hidden_dim, output_dim)
    ref = _reference_forward(z, params)

    # f32 weight path: matches the f32 reference to tight tolerance.
    prepared_f32 = prepare_decoder_params(params, weight_dtype=jnp.float32)
    out_f32 = jax.block_until_ready(variational_decoder_forward(z, prepared_f32))
    assert out_f32.shape == (batch, seq, output_dim)
    assert jnp.allclose(out_f32, ref, atol=1e-5, rtol=1e-5), \
        float(jnp.max(jnp.abs(out_f32 - ref)))

    # bf16 weight path (default): halves weight DMA/VMEM, f32 MXU accumulation; the
    # inter-layer activations are also bf16, so compare with a looser tolerance.
    prepared_bf16 = prepare_decoder_params(params)   # weight_dtype defaults to bf16
    out_bf16 = jax.block_until_ready(variational_decoder_forward(z, prepared_bf16))
    assert out_bf16.shape == (batch, seq, output_dim)
    assert jnp.allclose(out_bf16, ref, atol=1e-1, rtol=1e-1), \
        float(jnp.max(jnp.abs(out_bf16 - ref)))

    print("KERNEL_OK")
</pallas_src>

<mosaic_0001>
module attributes {stable_mosaic.version = 11 : i64} {
  func.func @_decoder_kernel(%arg0: i32, %arg1: memref<8x16xf32, #tpu.memory_space<vmem>>, %arg2: memref<16x128xf32, #tpu.memory_space<vmem>>, %arg3: memref<1x128xf32, #tpu.memory_space<vmem>>, %arg4: memref<128x128xf32, #tpu.memory_space<vmem>>, %arg5: memref<1x128xf32, #tpu.memory_space<vmem>>, %arg6: memref<128x16xf32, #tpu.memory_space<vmem>>, %arg7: memref<1x16xf32, #tpu.memory_space<vmem>>, %arg8: memref<8x16xf32, #tpu.memory_space<vmem>>) attributes {dimension_semantics = [#tpu.dimension_semantics<parallel>], iteration_bounds = array<i64: 2>, scalar_prefetch = 0 : i64, scratch_operands = 0 : i64, tpu.core_type = #tpu.core_type<tc>, window_params = [{transform_indices = @transform_0, window_bounds = array<i64: 8, 16>}, {pipeline_mode = #tpu.pipeline_mode<synchronous>, transform_indices = @transform_1, window_bounds = array<i64: 16, 128>}, {pipeline_mode = #tpu.pipeline_mode<synchronous>, transform_indices = @transform_2, window_bounds = array<i64: 1, 128>}, {pipeline_mode = #tpu.pipeline_mode<synchronous>, transform_indices = @transform_3, window_bounds = array<i64: 128, 128>}, {pipeline_mode = #tpu.pipeline_mode<synchronous>, transform_indices = @transform_4, window_bounds = array<i64: 1, 128>}, {pipeline_mode = #tpu.pipeline_mode<synchronous>, transform_indices = @transform_5, window_bounds = array<i64: 128, 16>}, {pipeline_mode = #tpu.pipeline_mode<synchronous>, transform_indices = @transform_6, window_bounds = array<i64: 1, 16>}, {transform_indices = @transform_7, window_bounds = array<i64: 8, 16>}]} {
    %c0 = arith.constant 0 : index
    %c0_0 = arith.constant 0 : index
    %0 = vector.load %arg1[%c0, %c0_0] : memref<8x16xf32, #tpu.memory_space<vmem>>, vector<8x16xf32>
    %c0_1 = arith.constant 0 : index
    %c0_2 = arith.constant 0 : index
    %1 = vector.load %arg2[%c0_1, %c0_2] : memref<16x128xf32, #tpu.memory_space<vmem>>, vector<16x128xf32>
    %cst = arith.constant dense<0.000000e+00> : vector<8x128xf32>
    %2 = tpu.matmul %0, %1, %cst {dimension_numbers = #tpu.dot_dimension_numbers<[1], [0], [0], [1], [0, 0, 1, 1], [], []>} : vector<8x16xf32>, vector<16x128xf32>, vector<8x128xf32> -> vector<8x128xf32>
    %c0_3 = arith.constant 0 : index
    %c0_4 = arith.constant 0 : index
    %3 = vector.load %arg3[%c0_3, %c0_4] : memref<1x128xf32, #tpu.memory_space<vmem>>, vector<1x128xf32>
    %4 = vector.broadcast %3 : vector<1x128xf32> to vector<8x128xf32>
    %5 = arith.addf %2, %4 : vector<8x128xf32>
    %cst_5 = arith.constant 0.000000e+00 : f32
    %6 = vector.broadcast %cst_5 : f32 to vector<8x128xf32>
    %7 = arith.maximumf %5, %6 : vector<8x128xf32>
    %c0_6 = arith.constant 0 : index
    %c0_7 = arith.constant 0 : index
    %8 = vector.load %arg4[%c0_6, %c0_7] : memref<128x128xf32, #tpu.memory_space<vmem>>, vector<128x128xf32>
    %cst_8 = arith.constant dense<0.000000e+00> : vector<8x128xf32>
    %9 = tpu.matmul %7, %8, %cst_8 {dimension_numbers = #tpu.dot_dimension_numbers<[1], [0], [0], [1], [0, 0, 1, 1], [], []>} : vector<8x128xf32>, vector<128x128xf32>, vector<8x128xf32> -> vector<8x128xf32>
    %c0_9 = arith.constant 0 : index
    %c0_10 = arith.constant 0 : index
    %10 = vector.load %arg5[%c0_9, %c0_10] : memref<1x128xf32, #tpu.memory_space<vmem>>, vector<1x128xf32>
    %11 = vector.broadcast %10 : vector<1x128xf32> to vector<8x128xf32>
    %12 = arith.addf %9, %11 : vector<8x128xf32>
    %cst_11 = arith.constant 0.000000e+00 : f32
    %13 = vector.broadcast %cst_11 : f32 to vector<8x128xf32>
    %14 = arith.maximumf %12, %13 : vector<8x128xf32>
    %c0_12 = arith.constant 0 : index
    %c0_13 = arith.constant 0 : index
    %15 = vector.load %arg6[%c0_12, %c0_13] : memref<128x16xf32, #tpu.memory_space<vmem>>, vector<128x16xf32>
    %cst_14 = arith.constant dense<0.000000e+00> : vector<8x16xf32>
    %16 = tpu.matmul %14, %15, %cst_14 {dimension_numbers = #tpu.dot_dimension_numbers<[1], [0], [0], [1], [0, 0, 1, 1], [], []>} : vector<8x128xf32>, vector<128x16xf32>, vector<8x16xf32> -> vector<8x16xf32>
    %c0_15 = arith.constant 0 : index
    %c0_16 = arith.constant 0 : index
    %17 = vector.load %arg7[%c0_15, %c0_16] : memref<1x16xf32, #tpu.memory_space<vmem>>, vector<1x16xf32>
    %18 = vector.broadcast %17 : vector<1x16xf32> to vector<8x16xf32>
    %19 = arith.addf %16, %18 : vector<8x16xf32>
    %c0_17 = arith.constant 0 : index
    %c0_18 = arith.constant 0 : index
    %20 = vector.load %arg8[%c0_17, %c0_18] : memref<8x16xf32, #tpu.memory_space<vmem>>, vector<8x16xf32>
    tpu.vector_store %arg8[%c0_17, %c0_18], %19 {strides = array<i32>} : memref<8x16xf32, #tpu.memory_space<vmem>>, vector<8x16xf32>,
    return
  }
  func.func @transform_0(%arg0: i32) -> (i32, i32) {
    %c0_i32 = arith.constant 0 : i32
    %c0_i32_0 = arith.constant 0 : i32
    return %arg0, %c0_i32 : i32, i32
  }
  func.func @transform_1(%arg0: i32) -> (i32, i32) {
    %c0_i32 = arith.constant 0 : i32
    %c0_i32_0 = arith.constant 0 : i32
    %c0_i32_1 = arith.constant 0 : i32
    return %c0_i32, %c0_i32_0 : i32, i32
  }
  func.func @transform_2(%arg0: i32) -> (i32, i32) {
    %c0_i32 = arith.constant 0 : i32
    %c0_i32_0 = arith.constant 0 : i32
    %c0_i32_1 = arith.constant 0 : i32
    return %c0_i32, %c0_i32_0 : i32, i32
  }
  func.func @transform_3(%arg0: i32) -> (i32, i32) {
    %c0_i32 = arith.constant 0 : i32
    %c0_i32_0 = arith.constant 0 : i32
    %c0_i32_1 = arith.constant 0 : i32
    return %c0_i32, %c0_i32_0 : i32, i32
  }
  func.func @transform_4(%arg0: i32) -> (i32, i32) {
    %c0_i32 = arith.constant 0 : i32
    %c0_i32_0 = arith.constant 0 : i32
    %c0_i32_1 = arith.constant 0 : i32
    return %c0_i32, %c0_i32_0 : i32, i32
  }
  func.func @transform_5(%arg0: i32) -> (i32, i32) {
    %c0_i32 = arith.constant 0 : i32
    %c0_i32_0 = arith.constant 0 : i32
    %c0_i32_1 = arith.constant 0 : i32
    return %c0_i32, %c0_i32_0 : i32, i32
  }
  func.func @transform_6(%arg0: i32) -> (i32, i32) {
    %c0_i32 = arith.constant 0 : i32
    %c0_i32_0 = arith.constant 0 : i32
    %c0_i32_1 = arith.constant 0 : i32
    return %c0_i32, %c0_i32_0 : i32, i32
  }
  func.func @transform_7(%arg0: i32) -> (i32, i32) {
    %c0_i32 = arith.constant 0 : i32
    %c0_i32_0 = arith.constant 0 : i32
    return %arg0, %c0_i32 : i32, i32
  }
}

</mosaic_0001>

<bundles_post_ra>
// kernel: tpu_custom_call.1
= control target key start
LH: loop header
LB: loop body
LE: loop exit
PB: predicated region body
PF: predicated region fallthrough
CT: control target
= control target key end

     0   :  { %12 = vsyncpa [#allocation3], 0  ;;  %s1288_s0 = inlined_call_operand.vmem [shape: f32[16,16], index: 0, kind: input, shape index: {}]   ;;  %s1289_s1 = inlined_call_operand.hbm [shape: f32[16,128], index: 1, kind: input, shape index: {}]   ;;  %s1290_s2 = inlined_call_operand.vmem [shape: f32[1,128], index: 2, kind: input, shape index: {}]   ;;  %s1291_s3 = inlined_call_operand.vmem [shape: f32[128,128], index: 3, kind: input, shape index: {}]   ;;  %s1292_s4 = inlined_call_operand.vmem [shape: f32[1,128], index: 4, kind: input, shape index: {}]   ;;  %s1293_s5 = inlined_call_operand.vmem [shape: f32[128,16], index: 5, kind: input, shape index: {}]   ;;  %s1294_s6 = inlined_call_operand.vmem [shape: f32[1,16], index: 6, kind: input, shape index: {}]   ;;  %s1295_s7 = inlined_call_operand.hbm [shape: f32[16,16], index: 7, kind: output, shape index: {}]  }
   0x1   :  { %13 = vsyncpa [#allocation4], 0 }
   0x2   :  { %15 = vsyncpa [#allocation4 + $0x1], 0  ;;  %s1026_s24 = smov 0   ;;  %s1028_s25 = smov 0  }
   0x3   :  { %s1030_s26 = smov 0   ;;  %s1032_s27 = smov 0  }
   0x4 LB: > { %s1047_s28 = sadd.s32 4294967295, %s977_s27   ;;  %s647_s29 = sadd.s32 4294967294, %s977_s27   ;;  %s977_s27 = sphi %s1032_s27, %s1311_s27   ;;  %s973_s26 = sphi %s1030_s26, %s1310_s26   ;;  %s969_s25 = sphi %s1028_s25, %s1309_s25   ;;  %s965_s24 = sphi %s1026_s24, %s1308_s24  }
   0x5   : > { %s1051_s30 = sadd.s32 1, %s977_s27   ;;  %s180_s8 = sadd.s32 1, %s973_s26 }
   0x6   : > { %s177_s9 = ssub.s32 %s977_s27, %s1051_s30  ;;  %p190_p0 = scmp.ne.s32.totalorder %s973_s26, %s969_s25 }
   0x7   : > { %p178_p1 = scmp.eq.s32.totalorder %s177_s9, 0  ;;  %p191_p2 = scmp.eq.s32.totalorder %s1047_s28, 1 }
   0x8   : > { %p196_p3 = scmp.ne.s32.totalorder %s969_s25, %s965_s24  ;;  %p197_p4 = scmp.eq.s32.totalorder %s647_s29, 1 }
   0x9   : > { %s1062_s10 = scalar_select %p178_p1, %s973_s26, %s180_s8  }
   0xa   : > { %p1064_p5 = por %p191_p2, %p190_p0  ;;  %p1068_p6 = por %p197_p4, %p196_p3 }
   0xb   : > { %p648_p7 = scmp.ge.s32.totalorder %s977_s27, 1  ;;  %p204_p8 = scmp.lt.s32.totalorder %s977_s27, 3 }
   0xc   : > { %s1299_s11 = scalar_select %p1064_p5, 1, 0 }
   0xd   : > { %s1300_s12 = scalar_select %p1068_p6, 1, 0 }
   0xe   : > { %p1296_p9 = scmp.eq.s32.totalorder %s1047_s28, 0  ;;  %p1075_p10 = pnand %p648_p7, %p204_p8 }
   0xf   : > { %s979_s14 = smov [#allocation2]   ;;  %s883_s19 = scalar_lea.hbm %s1289_s1, 256 }
  0x10   : > { %s1301_s13 = scalar_select %p1075_p10, 1, 0 }
  0x11   : > { %s216_s15 = sshll.u32 %s979_s14, 4  ;;  %p834_p11 = pneg %p1075_p10  ;;  %s217_s15 = int_to_ptr.vmem [resolvable:$true] %s216_s15 }
  0x12   : > { %p884_p13 = scmp.ne.s32.totalorder %s1289_s1, %s883_s19  ;;  %p890_p3 = scmp.lt.u32.totalorder %s883_s19, %s1289_s1 }
  0x13   : > { %p1083_p12 = pnand %p1296_p9, %p834_p11 }
  0x15   : > { %p885_p0 = pneg %p1083_p12 }
  0x17   : > { %p886_p1 = pnand %p885_p0, %p884_p13 }
  0x19   : > { %p887_p2 = pneg %p886_p1 }
  0x1b   : > { %p892_p4 = pnand %p890_p3, %p887_p2 }
  0x1d   : > { %895 = shalt.err (!%p892_p4)
}
  0x1e   : > { %s896_s29 = scalar_lea.vmem %s217_s15, 256  ;;  %p904_p9 = scmp.lt.s32.totalorder %s217_s15, %s217_s15 }
  0x1f   : > { %p897_p7 = scmp.ne.s32.totalorder %s217_s15, %s896_s29  ;;  %p905_p6 = scmp.lt.s32.totalorder %s896_s29, %s896_s29 }
  0x21   : > { %p899_p8 = pnand %p897_p7, %p885_p0  ;;  %p906_p5 = por %p905_p6, %p904_p9 }
  0x23   : > { %p900_p11 = pneg %p899_p8 }
  0x25   : > { %p907_p10 = pnand %p906_p5, %p900_p11 }
  0x27   : > { %910 = shalt.err (!%p907_p10)
}
  0x28   : > { %s980_s8 = smov 128   ;;  %s981_s9 = smov 8  }
  0x29   : > { %837 = dma.hbm_to_vmem [thread:$0]  (!%p1083_p12), %s1289_s1, 256, %s217_s15, [#allocation3], %s980_s8, %s980_s8, %s981_s9  }
  0x2a   : > { %p1303_p13 = scmp.ne.s32.totalorder %s1301_s13, 0 }
  0x2b   : > { %p1304_p1 = scmp.eq.s32.totalorder (!%p1303_p13), %s1047_s28, 0 }
  0x2c   : > { %254 = sbr.rel (%p1303_p13) target bundleno = 719 (0x2cf), region = 48 }
  0x33   : > { %956 = dma.done.wait (%p1304_p1), [#allocation3], 256   ;;  %p1305_p0 = pmov %p1304_p1 }
  0x34   : > { %p285_p5 = scmp.lt.s32.totalorder %s1047_s28, 1  ;;  %v982_v0 = vmov 0.0|0.0   ;;  %vm983_vm0 = vmmov 0   ;;  %v984_v1 = vmov 0.0   ;;  %v290_v2 = vld [vmem:[#allocation2] sm:$0xff]  ;;  %v291_v3 = vld [vmem:[#allocation2 + $0x8] sm:$0xff] }
  0x35   : > { %958 = vsyncadd (%p1305_p0), [#allocation3], 4294967040  ;;  %777 = vmatprep.subr.bf16.mxu0 %v982_v0  ;;  %704 = vmatprep.mubr.msk.f32.mxu0 %vm983_vm0, %v984_v1  ;;  %v778_v4 = vpack.c.bf16 %v291_v3, %v290_v2  ;;  %v374_v5 = vld [vmem:[%s1291_s3] sm:$0xff]  ;;  %v375_v6 = vld [vmem:[%s1291_s3 + $0x8] sm:$0xff]  ;;  %vm299_vm1 = vcmask 130048   ;;  %s282_s18 = sand.u32 1, %s969_s25  }
  0x36   : > { %s286_s15 = scalar_select %p285_p5, %s1047_s28, 1  ;;  %780 = vmatprep.subr.bf16.mxu1 %v982_v0  ;;  %739 = vmatprep.mubr.msk.f32.mxu1 %vm983_vm0, %v984_v1  ;;  %v376_v7 = vld [vmem:[%s1291_s3 + $0x10] sm:$0xff]  ;;  %v781_v8 = vpack.c.bf16 %v375_v6, %v374_v5  ;;  %v377_v9 = vld [vmem:[%s1291_s3 + $0x18] sm:$0xff]  ;;  %v378_v12 = vld [vmem:[%s1291_s3 + $0x20] sm:$0xff] }
  0x37   : > { %779 = vmatpush3.bf16.msra.mxu0 %v778_v4  ;;  %v784_v11 = vpack.c.bf16 %v377_v9, %v376_v7  ;;  %v379_v13 = vld [vmem:[%s1291_s3 + $0x28] sm:$0xff]  ;;  %v380_v15 = vld [vmem:[%s1291_s3 + $0x30] sm:$0xff]  ;;  %v381_v16 = vld [vmem:[%s1291_s3 + $0x38] sm:$0xff]  ;;  %s660_s22 = sshll.u32 %s1047_s28, 7  ;;  %s563_s17 = scalar_lea.sflag [#allocation4], %s282_s18 }
  0x38   : > { %s654_s13 = sshll.u32 %s286_s15, 3  ;;  %782 = vmatpush3.bf16.msra.mxu1 %v781_v8  ;;  %804 = vmatprep.subr.bf16.mxu0 %v982_v0  ;;  %v787_v14 = vpack.c.bf16 %v379_v13, %v378_v12  ;;  %v790_v17 = vpack.c.bf16 %v381_v16, %v380_v15  ;;  %v382_v18 = vld [vmem:[%s1291_s3 + $0x40] sm:$0xff]  ;;  %v383_v19 = vld [vmem:[%s1291_s3 + $0x48] sm:$0xff]  ;;  %v384_v21 = vld [vmem:[%s1291_s3 + $0x50] sm:$0xff]  ;;  %s1245_s14 = scalar_lea.hbm %s1295_s7, %s660_s22 }
  0x39   : > { %s288_s19 = scalar_lea.vmem %s1288_s0, %s654_s13  ;;  %783 = vmatprep.subr.bf16.mxu1 %v982_v0  ;;  %v793_v20 = vpack.c.bf16 %v383_v19, %v382_v18  ;;  %v385_v22 = vld [vmem:[%s1291_s3 + $0x58] sm:$0xff]  ;;  %v386_v24 = vld [vmem:[%s1291_s3 + $0x60] sm:$0xff]  ;;  %v387_v25 = vld [vmem:[%s1291_s3 + $0x68] sm:$0xff]  ;;  %p1306_p9 = scmp.ne.s32.totalorder %s1299_s11, 0 }
  0x3a   : > { %v289_v10 = vld [vmem:[%s288_s19] sm:$0xff]  ;;  %v796_v23 = vpack.c.bf16 %v385_v22, %v384_v21  ;;  %v799_v26 = vpack.c.bf16 %v387_v25, %v386_v24  ;;  %v388_v27 = vld [vmem:[%s1291_s3 + $0x70] sm:$0xff]  ;;  %v389_v28 = vld [vmem:[%s1291_s3 + $0x78] sm:$0xff]  ;;  %s653_s19 = sshll.u32 %s282_s18, 3  ;;  %s985_s28 = smov [#allocation5]  }
  0x3b   : > { %705 = vmatmul.mubr.msk.f32.vlgmr.msra.gmra.mrb[0].mxu0 %vm299_vm1, %v289_v10  ;;  %v802_v29 = vpack.c.bf16 %v389_v28, %v388_v27  ;;  %v468_v30 = vld [vmem:[%s1293_s5] sm:$0xff]  ;;  %v469_v31 = vld [vmem:[%s1293_s5 + $0x8] sm:$0xff]  ;;  %v470_v32 = vld [vmem:[%s1293_s5 + $0x10] sm:$0xff]  ;;  %s284_s23 = scalar_lea.vmem [#allocation5], %s653_s19  ;;  %s915_s13 = sshll.u32 %s985_s28, 4  ;;  %s916_s13 = int_to_ptr.vmem [resolvable:$false] %s915_s13 }
  0x3c   : > { %774 = vmatprep.mubr.msk.f32.mxu0 %vm983_vm0, %v984_v1  ;;  %785 = vmatpush3.bf16.msra.mxu1 %v784_v11  ;;  %v805_v33 = vpack.c.bf16 %v469_v31, %v468_v30  ;;  %v471_v34 = vld [vmem:[%s1293_s5 + $0x18] sm:$0xff]  ;;  %v472_v36 = vld [vmem:[%s1293_s5 + $0x20] sm:$0xff]  ;;  %v473_v37 = vld [vmem:[%s1293_s5 + $0x28] sm:$0xff]  ;;  %s576_s29 = sshll.u32 %s284_s23, 4  ;;  %s917_s16 = scalar_lea.vmem %s916_s13, 256  ;;  %s1247_s29 = int_to_ptr.vmem [resolvable:$true] %s576_s29 }
  0x3d   : > { %786 = vmatprep.subr.bf16.mxu1 %v982_v0  ;;  %v808_v35 = vpack.c.bf16 %v471_v34, %v470_v32  ;;  %v811_v38 = vpack.c.bf16 %v473_v37, %v472_v36  ;;  %v474_v39 = vld [vmem:[%s1293_s5 + $0x30] sm:$0xff]  ;;  %v475_v40 = vld [vmem:[%s1293_s5 + $0x38] sm:$0xff]  ;;  %v476_v42 = vld [vmem:[%s1293_s5 + $0x40] sm:$0xff]  ;;  %s911_s15 = scalar_lea.vmem %s1247_s29, 128  ;;  %p918_p2 = scmp.lt.s32.totalorder %s1247_s29, %s916_s13 }
  0x3e   : > { %806 = vmatpush3.bf16.msra.mxu0 %v805_v33  ;;  %v814_v41 = vpack.c.bf16 %v475_v40, %v474_v39  ;;  %v477_v43 = vld [vmem:[%s1293_s5 + $0x48] sm:$0xff]  ;;  %v478_v45 = vld [vmem:[%s1293_s5 + $0x50] sm:$0xff]  ;;  %v479_v46 = vld [vmem:[%s1293_s5 + $0x58] sm:$0xff]  ;;  %p912_p6 = scmp.ne.s32.totalorder %s1247_s29, %s911_s15  ;;  %p919_p3 = scmp.lt.s32.totalorder %s917_s16, %s911_s15 }
  0x3f   : > { %807 = vmatprep.subr.bf16.mxu0 %v982_v0  ;;  %v817_v44 = vpack.c.bf16 %v477_v43, %v476_v42  ;;  %v820_v47 = vpack.c.bf16 %v479_v46, %v478_v45  ;;  %v480_v48 = vld [vmem:[%s1293_s5 + $0x60] sm:$0xff]  ;;  %v481_v49 = vld [vmem:[%s1293_s5 + $0x68] sm:$0xff]  ;;  %v482_v56 = vld [vmem:[%s1293_s5 + $0x70] sm:$0xff] }
  0x40   : > { %788 = vmatpush3.bf16.msra.mxu1 %v787_v14  ;;  %v823_v50 = vpack.c.bf16 %v481_v49, %v480_v48  ;;  %v655_v51 = vld [vmem:[%s1290_s2] ss:$0 sm:$0xff]  ;;  %v483_v57 = vld [vmem:[%s1293_s5 + $0x78] sm:$0xff]  ;;  %p913_p10 = pnand %p912_p6, %p1306_p9  ;;  %p920_p4 = por %p919_p3, %p918_p2 }
  0x41   : > { %789 = vmatprep.subr.bf16.mxu1 %v982_v0  ;;  %v826_v58 = vpack.c.bf16 %v483_v57, %v482_v56  ;;  %v657_v59 = vld [vmem:[%s1292_s4] ss:$0 sm:$0xff] }
  0x42   : > { %809 = vmatpush3.bf16.msra.mxu0 %v808_v35  ;;  %p914_p12 = pneg %p913_p10 }
  0x43   : > { %810 = vmatprep.subr.bf16.mxu0 %v982_v0 }
  0x44   : > { %791 = vmatpush3.bf16.msra.mxu1 %v790_v17  ;;  %p921_p7 = pnand %p920_p4, %p914_p12 }
  0x45   : > { %792 = vmatprep.subr.bf16.mxu1 %v982_v0 }
  0x46   : > { %812 = vmatpush3.bf16.msra.mxu0 %v811_v38 }
  0x47   : > { %813 = vmatprep.subr.bf16.mxu0 %v982_v0 }
  0x48   : > { %794 = vmatpush3.bf16.msra.mxu1 %v793_v20 }
  0x49   : > { %795 = vmatprep.subr.bf16.mxu1 %v982_v0 }
  0x4a   : > { %815 = vmatpush3.bf16.msra.mxu0 %v814_v41 }
  0x4b   : > { %816 = vmatprep.subr.bf16.mxu0 %v982_v0 }
  0x4c   : > { %797 = vmatpush3.bf16.msra.mxu1 %v796_v23 }
  0x4d   : > { %798 = vmatprep.subr.bf16.mxu1 %v982_v0 }
  0x4e   : > { %818 = vmatpush3.bf16.msra.mxu0 %v817_v44 }
  0x4f   : > { %819 = vmatprep.subr.bf16.mxu0 %v982_v0 }
  0x50   : > { %800 = vmatpush3.bf16.msra.mxu1 %v799_v26 }
  0x51   : > { %801 = vmatprep.subr.bf16.mxu1 %v982_v0 }
  0x52   : > { %821 = vmatpush3.bf16.msra.mxu0 %v820_v47 }
  0x53   : > { %822 = vmatprep.subr.bf16.mxu0 %v982_v0 }
  0x54   : > { %803 = vmatpush3.bf16.msra.mxu1 %v802_v29 }
  0x56   : > { %824 = vmatpush3.bf16.msra.mxu0 %v823_v50 }
  0x57   : > { %825 = vmatprep.subr.bf16.mxu0 %v982_v0  ;;  %v658_v0 = vld [vmem:[%s1294_s6] ss:$0 sm:$0xff] }
  0x5a   : > { %827 = vmatpush3.bf16.msra.mxu0 %v826_v58 }
 0x10e   : > { %v369_v52 = vpop.f32.mrb[0].mxu0 }
 0x10f   : > { %v370_v53 = vadd.f32 %v655_v51, %v369_v52  ;;  %v706_v54 = vpop.f32.mrb[1].mxu0 }
 0x111   : > { %v373_v55 = vmax.f32 %v370_v53, 0.0 }
 0x113   : > { %740 = vmatmul.mubr.f32.vlgmr.msra.gmra.mrb[0].mxu1 %v373_v55 }
 0x1e6   : > { %v463_v60 = vpop.f32.mrb[0].mxu1 }
 0x1e7   : > { %v464_v61 = vadd.f32 %v657_v59, %v463_v60  ;;  %v741_v62 = vpop.f32.mrb[1].mxu1 }
 0x1e9   : > { %v467_v63 = vmax.f32 %v464_v61, 0.0 }
 0x1eb   : > { %775 = vmatmul.mubr.f32.vlgmr.msra.gmra.mrb[2].mxu0 %v467_v63 }
 0x2be   : > { %v557_v1 = vpop.f32.mrb[2].mxu0 }
 0x2bf   : > { %v558_v2 = vadd.f32 %v658_v0, %v557_v1  ;;  %v776_v3 = vpop.f32.mrb[3].mxu0 }
 0x2c1   : > { %561 = vst.msk [vmem:[%s284_s23] sm:$0xff] %vm299_vm1, %v558_v2 }
 0x2c2   : > { %924 = shalt.err (!%p921_p7)
}
 0x2c3   : > { %s925_s18 = scalar_lea.hbm %s1245_s14, 128  ;;  %s929_s21 = scalar_lea.hbm %s1295_s7, 256 }
 0x2c4   : > { %p926_p8 = scmp.ne.s32.totalorder %s1245_s14, %s925_s18  ;;  %p930_p1 = scmp.lt.u32.totalorder %s1245_s14, %s1295_s7 }
 0x2c5   : > { %p931_p0 = scmp.lt.u32.totalorder %s929_s21, %s925_s18  ;;  %p933_p6 = scmp.lt.u32.totalorder %s925_s18, %s1245_s14 }
 0x2c6   : > { %p927_p11 = pnand %p926_p8, %p1306_p9 }
 0x2c7   : > { %p932_p5 = por %p931_p0, %p930_p1 }
 0x2c8   : > { %p928_p13 = pneg %p927_p11 }
 0x2c9   : > { %p934_p10 = por %p933_p6, %p932_p5 }
 0x2cb   : > { %p935_p12 = pnand %p934_p10, %p928_p13 }
 0x2cd   : > { %938 = shalt.err (!%p935_p12)
}
 0x2ce   : > { %832 = dma.vmem_to_hbm [thread:$0]  (%p1306_p9), %s1247_s29, 128, %s1245_s14, %s563_s17  }
 0x2cf PF: > { %p844_p2 = scmp.ge.s32.totalorder %s977_s27, 2  ;;  %s588_s8 = sand.u32 1, %s965_s24  }
 0x2d0   : > { %p1307_p3 = scmp.ne.s32.totalorder %s1300_s12, 0  ;;  %s589_s9 = scalar_lea.sflag [#allocation4], %s588_s8 }
 0x2d2   : > { %p839_p4 = pnand %p844_p2, %p1307_p3 }
 0x2d4   : > { %960 = dma.done.wait (!%p839_p4), %s589_s9, 128  }
 0x2d5   : > { %962 = vsyncadd (!%p839_p4), %s589_s9, 4294967168  ;;  %p18_p7 = scmp.ge.s32.totalorder %s1051_s30, 4   ;;  %s1308_s24 = smov %s969_s25 }
 0x2d6   : > { %s1309_s25 = smov %s973_s26  ;;  %s1310_s26 = smov %s1062_s10 }
 0x2d7   : > { %s1311_s27 = smov %s1051_s30  ;;  %20 = sbr.rel (!%p18_p7) target bundleno = 4 (0x4), region = 88 }
 0x2de   :  { %594 = vsyncpa [#allocation3], 1 }
 0x2df   :  { %596 = vsyncpa [#allocation3 + $0x1], 1 }
 0x2e0   :  { %597 = vsyncpa [#allocation4], 1 }
 0x2e1   :  { %599 = vsyncpa [#allocation4 + $0x1], 1 }

</bundles_post_ra>
